<compile_context>
chip_gen: v7x
topology: tpu7x:2x2x1
jax: 0.10.0
libtpu: 0.0.40
codegen_flags: <defaults>
</compile_context>

<pallas_src>
import functools

import numpy as np
import jax
import jax.numpy as jnp
from jax import lax
from jax.experimental import pallas as pl
from jax.experimental.pallas import tpu as pltpu

PRIOR_SIGMA1 = 1.0
PRIOR_SIGMA2 = 0.0025
PRIOR_PI = 0.5

# Trace-time constants (folded out of the per-element hot loop).
_HALF_LOG_2PI = 0.5 * float(np.log(2.0 * np.pi))
_C1 = PRIOR_PI / (float(np.sqrt(2.0 * np.pi)) * PRIOR_SIGMA1)
_C2 = (1.0 - PRIOR_PI) / (float(np.sqrt(2.0 * np.pi)) * PRIOR_SIGMA2)
_K1 = 1.0 / (2.0 * PRIOR_SIGMA1 * PRIOR_SIGMA1)
_K2 = 1.0 / (2.0 * PRIOR_SIGMA2 * PRIOR_SIGMA2)


def _round_up(x, m):
    return (x + m - 1) // m * m


def _stable_softplus(x):
    # log(1 + exp(x)) without overflow: 1 exp + 1 log1p per element (EUP), rest VALU.
    return jnp.log1p(jnp.exp(-jnp.abs(x))) + jnp.maximum(x, 0.0)


def _log_prior_mixture(w):
    # log( c1*exp(-k1*w^2) + c2*exp(-k2*w^2) ), log-sum-exp form (k2 >> k1, so the
    # exp argument is always <= 0): 1 exp + 1 log per element.
    w2 = w * w
    return -_K1 * w2 + jnp.log(_C1 + _C2 * jnp.exp(-(_K2 - _K1) * w2))


def _bayesian_linear_kernel(
    x_ref,      # (B_pad, IN_pad)        f32
    wmu_ref,    # (TILE_OUT, IN_pad)     f32
    wrho_ref,   # (TILE_OUT, IN_pad)     f32
    weps_ref,   # (TILE_OUT, IN_pad)     f32
    bmu_ref,    # (1, TILE_OUT)          f32
    brho_ref,   # (1, TILE_OUT)          f32
    beps_ref,   # (1, TILE_OUT)          f32
    out_ref,    # (B_pad, TILE_OUT)      f32
    kl_ref,     # (1, 8, 128)            f32  per-tile KL partial (broadcast)
    *,
    out_features,
    in_features,
    tile_out,
    in_pad,
):
    o = pl.program_id(0)
    row_start = o * tile_out

    x = x_ref[...]
    w_mu = wmu_ref[...]
    w_rho = wrho_ref[...]
    w_eps = weps_ref[...]
    b_mu = bmu_ref[...]
    b_rho = brho_ref[...]
    b_eps = beps_ref[...]

    # softplus(rho), reparameterized sample.
    w_sigma = _stable_softplus(w_rho)
    b_sigma = _stable_softplus(b_rho)
    w = w_mu + w_eps * w_sigma
    b = b_mu + b_eps * b_sigma

    # output = x @ W.T + b  -- contract the last dims directly (no transpose).
    acc = lax.dot_general(
        x, w,
        dimension_numbers=(((1,), (1,)), ((), ())),
        preferred_element_type=jnp.float32,
    )
    out_ref[...] = (acc + b).astype(out_ref.dtype)

    # Validity masks for padded rows/cols (OUT/IN padding must not pollute the KL).
    w_rows = row_start + lax.broadcasted_iota(jnp.int32, (tile_out, in_pad), 0)
    w_cols = lax.broadcasted_iota(jnp.int32, (tile_out, in_pad), 1)
    w_mask = (w_rows < out_features) & (w_cols < in_features)
    b_cols = row_start + lax.broadcasted_iota(jnp.int32, (1, tile_out), 1)
    b_mask = b_cols < out_features

    # log q(w|theta): since w = mu + eps*sigma, (w-mu)^2/(2 sigma^2) == 0.5*eps^2.
    w_post = -_HALF_LOG_2PI - jnp.log(w_sigma) - 0.5 * (w_eps * w_eps)
    b_post = -_HALF_LOG_2PI - jnp.log(b_sigma) - 0.5 * (b_eps * b_eps)
    log_post = jnp.sum(jnp.where(w_mask, w_post, 0.0)) + jnp.sum(
        jnp.where(b_mask, b_post, 0.0)
    )

    # log p(w): scale-mixture prior, constant-folded + stable.
    w_prior = _log_prior_mixture(w)
    b_prior = _log_prior_mixture(b)
    log_prior = jnp.sum(jnp.where(w_mask, w_prior, 0.0)) + jnp.sum(
        jnp.where(b_mask, b_prior, 0.0)
    )

    kl_ref[...] = jnp.broadcast_to(log_post - log_prior, kl_ref.shape).astype(
        jnp.float32
    )


def _choose_tile_out(in_pad, out_features):
    # Keep 2 (double buffer) x 3 (mu,rho,eps) x TILE_OUT x IN_pad x 4B under ~12 MiB
    # (safe for v5e's 16 MiB scoped default and v7x's 64 MiB physical VMEM).
    budget = 12 * 1024 * 1024
    max_tile = (budget // (2 * 3 * 4 * in_pad)) // 128 * 128
    max_tile = max(128, max_tile)
    tile = min(max_tile, 512)                      # clamp; matmul tile never needs more
    tile = min(tile, _round_up(out_features, 128))  # don't exceed (padded) OUT
    return int(tile)


def bayesian_linear_forward(x, weight_mu, weight_rho, weight_eps,
                            bias_mu, bias_rho, bias_eps):
    """Returns (output, kl_divergence) matching BayesianLinear.forward(x, sample=True)."""
    B, in_features = x.shape
    out_features = weight_mu.shape[0]

    b_pad = _round_up(B, 8)
    in_pad = _round_up(in_features, 128)
    tile_out = _choose_tile_out(in_pad, out_features)
    out_pad = _round_up(out_features, tile_out)
    num_tiles = out_pad // tile_out

    def pad2(a, rows, cols):
        return jnp.pad(a, ((0, rows - a.shape[0]), (0, cols - a.shape[1])))

    x_p = pad2(x.astype(jnp.float32), b_pad, in_pad)
    wmu_p = pad2(weight_mu.astype(jnp.float32), out_pad, in_pad)
    wrho_p = pad2(weight_rho.astype(jnp.float32), out_pad, in_pad)
    weps_p = pad2(weight_eps.astype(jnp.float32), out_pad, in_pad)
    bmu_p = pad2(bias_mu.reshape(1, out_features).astype(jnp.float32), 1, out_pad)
    brho_p = pad2(bias_rho.reshape(1, out_features).astype(jnp.float32), 1, out_pad)
    beps_p = pad2(bias_eps.reshape(1, out_features).astype(jnp.float32), 1, out_pad)

    # Explicit VMEM budget: double-buffered weight tiles dominate.
    est_bytes = 2 * 4 * (
        3 * tile_out * in_pad + b_pad * in_pad + b_pad * tile_out + 3 * tile_out + 8 * 128
    )
    vmem_limit = int(min(max(est_bytes + (4 << 20), 32 << 20), 56 << 20))

    kernel = functools.partial(
        _bayesian_linear_kernel,
        out_features=out_features,
        in_features=in_features,
        tile_out=tile_out,
        in_pad=in_pad,
    )

    out_p, kl_partials = pl.pallas_call(
        kernel,
        grid=(num_tiles,),
        in_specs=[
            pl.BlockSpec((b_pad, in_pad), lambda o: (0, 0)),     # x (same block each step)
            pl.BlockSpec((tile_out, in_pad), lambda o: (o, 0)),  # weight_mu
            pl.BlockSpec((tile_out, in_pad), lambda o: (o, 0)),  # weight_rho
            pl.BlockSpec((tile_out, in_pad), lambda o: (o, 0)),  # weight_eps
            pl.BlockSpec((1, tile_out), lambda o: (0, o)),       # bias_mu
            pl.BlockSpec((1, tile_out), lambda o: (0, o)),       # bias_rho
            pl.BlockSpec((1, tile_out), lambda o: (0, o)),       # bias_eps
        ],
        out_specs=(
            pl.BlockSpec((b_pad, tile_out), lambda o: (0, o)),   # output tile
            pl.BlockSpec((1, 8, 128), lambda o: (o, 0, 0)),      # per-tile KL partial
        ),
        out_shape=(
            jax.ShapeDtypeStruct((b_pad, out_pad), jnp.float32),
            jax.ShapeDtypeStruct((num_tiles, 8, 128), jnp.float32),
        ),
        compiler_params=pltpu.CompilerParams(
            dimension_semantics=("parallel",),
            vmem_limit_bytes=vmem_limit,
        ),
    )(x_p, wmu_p, wrho_p, weps_p, bmu_p, brho_p, beps_p)

    out = out_p[:B, :out_features]
    kl = jnp.sum(kl_partials[:, 0, 0])
    return out, kl


def _reference_forward(x, weight_mu, weight_rho, weight_eps, bias_mu, bias_rho, bias_eps):
    """Pure-JAX reference mirroring the (naive) PyTorch module."""
    def log_gaussian(v, mu, sigma):
        return -0.5 * jnp.log(2.0 * np.pi * sigma * sigma) - (v - mu) ** 2 / (2.0 * sigma * sigma)

    def log_mixture(v):
        lg1 = log_gaussian(v, 0.0, PRIOR_SIGMA1)
        lg2 = log_gaussian(v, 0.0, PRIOR_SIGMA2)
        return jnp.log(PRIOR_PI * jnp.exp(lg1) + (1.0 - PRIOR_PI) * jnp.exp(lg2))

    w_sigma = jnp.log1p(jnp.exp(weight_rho))
    b_sigma = jnp.log1p(jnp.exp(bias_rho))
    w = weight_mu + weight_eps * w_sigma
    b = bias_mu + bias_eps * b_sigma
    log_post = jnp.sum(log_gaussian(w, weight_mu, w_sigma)) + jnp.sum(
        log_gaussian(b, bias_mu, b_sigma)
    )
    log_prior = jnp.sum(log_mixture(w)) + jnp.sum(log_mixture(b))
    out = x @ w.T + b
    return out, log_post - log_prior


if __name__ == "__main__":
    batch = 4
    in_features = 32
    out_features = 8

    key = jax.random.PRNGKey(0)
    k_x, k_wmu, k_wrho, k_bmu, k_brho, k_weps, k_beps = jax.random.split(key, 7)

    # Deterministic parameter init mirroring the PyTorch __init__:
    #   weight_mu ~ N(0, 0.1), weight_rho ~ N(-3, 0.1), same for bias.
    x = jax.random.normal(k_x, (batch, in_features), dtype=jnp.float32)
    weight_mu = 0.1 * jax.random.normal(k_wmu, (out_features, in_features), dtype=jnp.float32)
    weight_rho = -3.0 + 0.1 * jax.random.normal(k_wrho, (out_features, in_features), dtype=jnp.float32)
    bias_mu = 0.1 * jax.random.normal(k_bmu, (out_features,), dtype=jnp.float32)
    bias_rho = -3.0 + 0.1 * jax.random.normal(k_brho, (out_features,), dtype=jnp.float32)

    # Reparameterization noise (torch.randn_like equivalent), drawn once in glue
    # so the kernel is deterministic / reproducible.
    weight_eps = jax.random.normal(k_weps, (out_features, in_features), dtype=jnp.float32)
    bias_eps = jax.random.normal(k_beps, (out_features,), dtype=jnp.float32)

    out, kl = bayesian_linear_forward(
        x, weight_mu, weight_rho, weight_eps, bias_mu, bias_rho, bias_eps
    )
    jax.block_until_ready((out, kl))

    ref_out, ref_kl = _reference_forward(
        x, weight_mu, weight_rho, weight_eps, bias_mu, bias_rho, bias_eps
    )
    np.testing.assert_allclose(np.asarray(out), np.asarray(ref_out), rtol=1e-4, atol=1e-4)
    np.testing.assert_allclose(np.asarray(kl), np.asarray(ref_kl), rtol=1e-3, atol=1e-2)

    print("KERNEL_OK")
</pallas_src>

<mosaic_0001>
module attributes {stable_mosaic.version = 11 : i64} {
  func.func @_bayesian_linear_kernel(%arg0: i32, %arg1: memref<8x128xf32, #tpu.memory_space<vmem>>, %arg2: memref<128x128xf32, #tpu.memory_space<vmem>>, %arg3: memref<128x128xf32, #tpu.memory_space<vmem>>, %arg4: memref<128x128xf32, #tpu.memory_space<vmem>>, %arg5: memref<1x128xf32, #tpu.memory_space<vmem>>, %arg6: memref<1x128xf32, #tpu.memory_space<vmem>>, %arg7: memref<1x128xf32, #tpu.memory_space<vmem>>, %arg8: memref<8x128xf32, #tpu.memory_space<vmem>>, %arg9: memref<1x8x128xf32, #tpu.memory_space<vmem>>) attributes {dimension_semantics = [#tpu.dimension_semantics<parallel>], iteration_bounds = array<i64: 1>, scalar_prefetch = 0 : i64, scratch_operands = 0 : i64, tpu.core_type = #tpu.core_type<tc>, window_params = [{pipeline_mode = #tpu.pipeline_mode<synchronous>, transform_indices = @transform_0, window_bounds = array<i64: 8, 128>}, {transform_indices = @transform_1, window_bounds = array<i64: 128, 128>}, {transform_indices = @transform_2, window_bounds = array<i64: 128, 128>}, {transform_indices = @transform_3, window_bounds = array<i64: 128, 128>}, {transform_indices = @transform_4, window_bounds = array<i64: 1, 128>}, {transform_indices = @transform_5, window_bounds = array<i64: 1, 128>}, {transform_indices = @transform_6, window_bounds = array<i64: 1, 128>}, {transform_indices = @transform_7, window_bounds = array<i64: 8, 128>}, {transform_indices = @transform_8, window_bounds = array<i64: 1, 8, 128>}]} {
    %c128_i32 = arith.constant 128 : i32
    %0 = arith.muli %arg0, %c128_i32 : i32
    %c0 = arith.constant 0 : index
    %c0_0 = arith.constant 0 : index
    %1 = vector.load %arg1[%c0, %c0_0] : memref<8x128xf32, #tpu.memory_space<vmem>>, vector<8x128xf32>
    %c0_1 = arith.constant 0 : index
    %c0_2 = arith.constant 0 : index
    %2 = vector.load %arg2[%c0_1, %c0_2] : memref<128x128xf32, #tpu.memory_space<vmem>>, vector<128x128xf32>
    %c0_3 = arith.constant 0 : index
    %c0_4 = arith.constant 0 : index
    %3 = vector.load %arg3[%c0_3, %c0_4] : memref<128x128xf32, #tpu.memory_space<vmem>>, vector<128x128xf32>
    %c0_5 = arith.constant 0 : index
    %c0_6 = arith.constant 0 : index
    %4 = vector.load %arg4[%c0_5, %c0_6] : memref<128x128xf32, #tpu.memory_space<vmem>>, vector<128x128xf32>
    %c0_7 = arith.constant 0 : index
    %c0_8 = arith.constant 0 : index
    %5 = vector.load %arg5[%c0_7, %c0_8] : memref<1x128xf32, #tpu.memory_space<vmem>>, vector<1x128xf32>
    %c0_9 = arith.constant 0 : index
    %c0_10 = arith.constant 0 : index
    %6 = vector.load %arg6[%c0_9, %c0_10] : memref<1x128xf32, #tpu.memory_space<vmem>>, vector<1x128xf32>
    %c0_11 = arith.constant 0 : index
    %c0_12 = arith.constant 0 : index
    %7 = vector.load %arg7[%c0_11, %c0_12] : memref<1x128xf32, #tpu.memory_space<vmem>>, vector<1x128xf32>
    %8 = math.absf %3 : vector<128x128xf32>
    %cst = arith.constant 0.000000e+00 : f32
    %9 = vector.broadcast %cst : f32 to vector<128x128xf32>
    %10 = arith.subf %9, %8 : vector<128x128xf32>
    %11 = math.exp %10 : vector<128x128xf32>
    %12 = math.log1p %11 : vector<128x128xf32>
    %cst_13 = arith.constant 0.000000e+00 : f32
    %13 = vector.broadcast %cst_13 : f32 to vector<128x128xf32>
    %14 = arith.maximumf %3, %13 : vector<128x128xf32>
    %15 = arith.addf %12, %14 : vector<128x128xf32>
    %16 = math.absf %6 : vector<1x128xf32>
    %cst_14 = arith.constant 0.000000e+00 : f32
    %17 = vector.broadcast %cst_14 : f32 to vector<1x128xf32>
    %18 = arith.subf %17, %16 : vector<1x128xf32>
    %19 = math.exp %18 : vector<1x128xf32>
    %20 = math.log1p %19 : vector<1x128xf32>
    %cst_15 = arith.constant 0.000000e+00 : f32
    %21 = vector.broadcast %cst_15 : f32 to vector<1x128xf32>
    %22 = arith.maximumf %6, %21 : vector<1x128xf32>
    %23 = arith.addf %20, %22 : vector<1x128xf32>
    %24 = arith.mulf %4, %15 : vector<128x128xf32>
    %25 = arith.addf %2, %24 : vector<128x128xf32>
    %26 = arith.mulf %7, %23 : vector<1x128xf32>
    %27 = arith.addf %5, %26 : vector<1x128xf32>
    %cst_16 = arith.constant dense<0.000000e+00> : vector<8x128xf32>
    %28 = tpu.matmul %1, %25, %cst_16 {dimension_numbers = #tpu.dot_dimension_numbers<[1], [1], [0], [0], [0, 0, 1, 0], [], []>} : vector<8x128xf32>, vector<128x128xf32>, vector<8x128xf32> -> vector<8x128xf32>
    %29 = vector.broadcast %27 : vector<1x128xf32> to vector<8x128xf32>
    %30 = arith.addf %28, %29 : vector<8x128xf32>
    %c0_17 = arith.constant 0 : index
    %c0_18 = arith.constant 0 : index
    %31 = vector.load %arg8[%c0_17, %c0_18] : memref<8x128xf32, #tpu.memory_space<vmem>>, vector<8x128xf32>
    tpu.vector_store %arg8[%c0_17, %c0_18], %30 {strides = array<i32>} : memref<8x128xf32, #tpu.memory_space<vmem>>, vector<8x128xf32>,
    %32 = tpu.iota {dimensions = array<i32: 0>} : vector<128x128xi32>
    %33 = vector.broadcast %0 : i32 to vector<128x128xi32>
    %34 = arith.addi %33, %32 : vector<128x128xi32>
    %35 = tpu.iota {dimensions = array<i32: 1>} : vector<128x128xi32>
    %c8_i32 = arith.constant 8 : i32
    %36 = vector.broadcast %c8_i32 : i32 to vector<128x128xi32>
    %37 = arith.cmpi slt, %34, %36 : vector<128x128xi32>
    %c32_i32 = arith.constant 32 : i32
    %38 = vector.broadcast %c32_i32 : i32 to vector<128x128xi32>
    %39 = arith.cmpi slt, %35, %38 : vector<128x128xi32>
    %40 = arith.andi %37, %39 : vector<128x128xi1>
    %41 = tpu.iota {dimensions = array<i32: 1>} : vector<1x128xi32>
    %42 = vector.broadcast %0 : i32 to vector<1x128xi32>
    %43 = arith.addi %42, %41 : vector<1x128xi32>
    %c8_i32_19 = arith.constant 8 : i32
    %44 = vector.broadcast %c8_i32_19 : i32 to vector<1x128xi32>
    %45 = arith.cmpi slt, %43, %44 : vector<1x128xi32>
    %46 = math.log %15 : vector<128x128xf32>
    %cst_20 = arith.constant -0.918938517 : f32
    %47 = vector.broadcast %cst_20 : f32 to vector<128x128xf32>
    %48 = arith.subf %47, %46 : vector<128x128xf32>
    %49 = arith.mulf %4, %4 : vector<128x128xf32>
    %cst_21 = arith.constant 5.000000e-01 : f32
    %50 = vector.broadcast %cst_21 : f32 to vector<128x128xf32>
    %51 = arith.mulf %50, %49 : vector<128x128xf32>
    %52 = arith.subf %48, %51 : vector<128x128xf32>
    %53 = math.log %23 : vector<1x128xf32>
    %cst_22 = arith.constant -0.918938517 : f32
    %54 = vector.broadcast %cst_22 : f32 to vector<1x128xf32>
    %55 = arith.subf %54, %53 : vector<1x128xf32>
    %56 = arith.mulf %7, %7 : vector<1x128xf32>
    %cst_23 = arith.constant 5.000000e-01 : f32
    %57 = vector.broadcast %cst_23 : f32 to vector<1x128xf32>
    %58 = arith.mulf %57, %56 : vector<1x128xf32>
    %59 = arith.subf %55, %58 : vector<1x128xf32>
    %cst_24 = arith.constant 0.000000e+00 : f32
    %60 = vector.broadcast %cst_24 : f32 to vector<128x128xf32>
    %61 = arith.select %40, %52, %60 : vector<128x128xi1>, vector<128x128xf32>
    %62 = vector.shape_cast %61 : vector<128x128xf32> to vector<1x128x128xf32>
    %cst_25 = arith.constant dense<0.000000e+00> : vector<1xf32>
    %63 = vector.multi_reduction <add>, %62, %cst_25 [1, 2] : vector<1x128x128xf32> to vector<1xf32>
    %64 = vector.shape_cast %63 : vector<1xf32> to vector<1x1x1xf32>
    %65 = vector.extract %64[0, 0, 0] : f32 from vector<1x1x1xf32>
    %cst_26 = arith.constant 0.000000e+00 : f32
    %66 = vector.broadcast %cst_26 : f32 to vector<1x128xf32>
    %67 = arith.select %45, %59, %66 : vector<1x128xi1>, vector<1x128xf32>
    %68 = vector.shape_cast %67 : vector<1x128xf32> to vector<1x1x128xf32>
    %cst_27 = arith.constant dense<0.000000e+00> : vector<1xf32>
    %69 = vector.multi_reduction <add>, %68, %cst_27 [1, 2] : vector<1x1x128xf32> to vector<1xf32>
    %70 = vector.shape_cast %69 : vector<1xf32> to vector<1x1x1xf32>
    %71 = vector.extract %70[0, 0, 0] : f32 from vector<1x1x1xf32>
    %72 = arith.addf %65, %71 : f32
    %73 = arith.mulf %25, %25 : vector<128x128xf32>
    %cst_28 = arith.constant -5.000000e-01 : f32
    %74 = vector.broadcast %cst_28 : f32 to vector<128x128xf32>
    %75 = arith.mulf %74, %73 : vector<128x128xf32>
    %cst_29 = arith.constant -7.999950e+04 : f32
    %76 = vector.broadcast %cst_29 : f32 to vector<128x128xf32>
    %77 = arith.mulf %76, %73 : vector<128x128xf32>
    %78 = math.exp %77 : vector<128x128xf32>
    %cst_30 = arith.constant 79.7884598 : f32
    %79 = vector.broadcast %cst_30 : f32 to vector<128x128xf32>
    %80 = arith.mulf %79, %78 : vector<128x128xf32>
    %cst_31 = arith.constant 0.199471146 : f32
    %81 = vector.broadcast %cst_31 : f32 to vector<128x128xf32>
    %82 = arith.addf %81, %80 : vector<128x128xf32>
    %83 = math.log %82 : vector<128x128xf32>
    %84 = arith.addf %75, %83 : vector<128x128xf32>
    %85 = arith.mulf %27, %27 : vector<1x128xf32>
    %cst_32 = arith.constant -5.000000e-01 : f32
    %86 = vector.broadcast %cst_32 : f32 to vector<1x128xf32>
    %87 = arith.mulf %86, %85 : vector<1x128xf32>
    %cst_33 = arith.constant -7.999950e+04 : f32
    %88 = vector.broadcast %cst_33 : f32 to vector<1x128xf32>
    %89 = arith.mulf %88, %85 : vector<1x128xf32>
    %90 = math.exp %89 : vector<1x128xf32>
    %cst_34 = arith.constant 79.7884598 : f32
    %91 = vector.broadcast %cst_34 : f32 to vector<1x128xf32>
    %92 = arith.mulf %91, %90 : vector<1x128xf32>
    %cst_35 = arith.constant 0.199471146 : f32
    %93 = vector.broadcast %cst_35 : f32 to vector<1x128xf32>
    %94 = arith.addf %93, %92 : vector<1x128xf32>
    %95 = math.log %94 : vector<1x128xf32>
    %96 = arith.addf %87, %95 : vector<1x128xf32>
    %cst_36 = arith.constant 0.000000e+00 : f32
    %97 = vector.broadcast %cst_36 : f32 to vector<128x128xf32>
    %98 = arith.select %40, %84, %97 : vector<128x128xi1>, vector<128x128xf32>
    %99 = vector.shape_cast %98 : vector<128x128xf32> to vector<1x128x128xf32>
    %cst_37 = arith.constant dense<0.000000e+00> : vector<1xf32>
    %100 = vector.multi_reduction <add>, %99, %cst_37 [1, 2] : vector<1x128x128xf32> to vector<1xf32>
    %101 = vector.shape_cast %100 : vector<1xf32> to vector<1x1x1xf32>
    %102 = vector.extract %101[0, 0, 0] : f32 from vector<1x1x1xf32>
    %cst_38 = arith.constant 0.000000e+00 : f32
    %103 = vector.broadcast %cst_38 : f32 to vector<1x128xf32>
    %104 = arith.select %45, %96, %103 : vector<1x128xi1>, vector<1x128xf32>
    %105 = vector.shape_cast %104 : vector<1x128xf32> to vector<1x1x128xf32>
    %cst_39 = arith.constant dense<0.000000e+00> : vector<1xf32>
    %106 = vector.multi_reduction <add>, %105, %cst_39 [1, 2] : vector<1x1x128xf32> to vector<1xf32>
    %107 = vector.shape_cast %106 : vector<1xf32> to vector<1x1x1xf32>
    %108 = vector.extract %107[0, 0, 0] : f32 from vector<1x1x1xf32>
    %109 = arith.addf %102, %108 : f32
    %110 = arith.subf %72, %109 : f32
    %111 = vector.broadcast %110 : f32 to vector<1x8x128xf32>
    %c0_40 = arith.constant 0 : index
    %c0_41 = arith.constant 0 : index
    %c0_42 = arith.constant 0 : index
    %112 = vector.load %arg9[%c0_40, %c0_41, %c0_42] : memref<1x8x128xf32, #tpu.memory_space<vmem>>, vector<1x8x128xf32>
    tpu.vector_store %arg9[%c0_40, %c0_41, %c0_42], %111 {strides = array<i32>} : memref<1x8x128xf32, #tpu.memory_space<vmem>>, vector<1x8x128xf32>,
    return
  }
  func.func @transform_0(%arg0: i32) -> (i32, i32) {
    %c0_i32 = arith.constant 0 : i32
    %c0_i32_0 = arith.constant 0 : i32
    %c0_i32_1 = arith.constant 0 : i32
    return %c0_i32, %c0_i32_0 : i32, i32
  }
  func.func @transform_1(%arg0: i32) -> (i32, i32) {
    %c0_i32 = arith.constant 0 : i32
    %c0_i32_0 = arith.constant 0 : i32
    return %arg0, %c0_i32 : i32, i32
  }
  func.func @transform_2(%arg0: i32) -> (i32, i32) {
    %c0_i32 = arith.constant 0 : i32
    %c0_i32_0 = arith.constant 0 : i32
    return %arg0, %c0_i32 : i32, i32
  }
  func.func @transform_3(%arg0: i32) -> (i32, i32) {
    %c0_i32 = arith.constant 0 : i32
    %c0_i32_0 = arith.constant 0 : i32
    return %arg0, %c0_i32 : i32, i32
  }
  func.func @transform_4(%arg0: i32) -> (i32, i32) {
    %c0_i32 = arith.constant 0 : i32
    %c0_i32_0 = arith.constant 0 : i32
    return %c0_i32, %arg0 : i32, i32
  }
  func.func @transform_5(%arg0: i32) -> (i32, i32) {
    %c0_i32 = arith.constant 0 : i32
    %c0_i32_0 = arith.constant 0 : i32
    return %c0_i32, %arg0 : i32, i32
  }
  func.func @transform_6(%arg0: i32) -> (i32, i32) {
    %c0_i32 = arith.constant 0 : i32
    %c0_i32_0 = arith.constant 0 : i32
    return %c0_i32, %arg0 : i32, i32
  }
  func.func @transform_7(%arg0: i32) -> (i32, i32) {
    %c0_i32 = arith.constant 0 : i32
    %c0_i32_0 = arith.constant 0 : i32
    return %c0_i32, %arg0 : i32, i32
  }
  func.func @transform_8(%arg0: i32) -> (i32, i32, i32) {
    %c0_i32 = arith.constant 0 : i32
    %c0_i32_0 = arith.constant 0 : i32
    %c0_i32_1 = arith.constant 0 : i32
    return %arg0, %c0_i32, %c0_i32_0 : i32, i32, i32
  }
}

</mosaic_0001>

<bundles_post_ra>
// kernel: tpu_custom_call.1
= control target key start
LH: loop header
LB: loop body
LE: loop exit
PB: predicated region body
PF: predicated region fallthrough
CT: control target
= control target key end

     0   :  { %14 = vsyncpa [#allocation3], 0  ;;  %s1707_s0 = inlined_call_operand.hbm [shape: f32[8,128], index: 0, kind: input, shape index: {}]   ;;  %s1708_s1 = inlined_call_operand.hbm [shape: f32[128,128], index: 1, kind: input, shape index: {}]   ;;  %s1709_s2 = inlined_call_operand.hbm [shape: f32[128,128], index: 2, kind: input, shape index: {}]   ;;  %s1710_s3 = inlined_call_operand.hbm [shape: f32[128,128], index: 3, kind: input, shape index: {}]   ;;  %s1711_s4 = inlined_call_operand.vmem [shape: f32[1,128], index: 4, kind: input, shape index: {}]   ;;  %s1712_s5 = inlined_call_operand.vmem [shape: f32[1,128], index: 5, kind: input, shape index: {}]   ;;  %s1713_s6 = inlined_call_operand.vmem [shape: f32[1,128], index: 6, kind: input, shape index: {}]   ;;  %s1714_s7 = inlined_call_operand.hbm [shape: f32[8,128], index: 7, kind: output, shape index: {0}]   ;;  %s1715_s8 = inlined_call_operand.hbm [shape: f32[1,8,128], index: 8, kind: output, shape index: {1}]  }
   0x1   :  { %15 = vsyncpa [#allocation6], 0 }
   0x2   :  { %16 = vsyncpa [#allocation9], 0 }
   0x3   :  { %17 = vsyncpa [#allocation4], 0 }
   0x4   :  { %18 = vsyncpa [#allocation12], 0  ;;  %s1301_s27 = smov [#allocation5]   ;;  %s1159_s9 = scalar_lea.hbm %s1708_s1, 2048 }
   0x5   :  { %s34_s28 = sshll.u32 %s1301_s27, 4  ;;  %p1160_p0 = scmp.ne.s32.totalorder %s1708_s1, %s1159_s9  ;;  %s35_s28 = int_to_ptr.vmem [resolvable:$true] %s34_s28 }
   0x6   :  { %p1163_p1 = scmp.lt.u32.totalorder %s1159_s9, %s1708_s1 }
   0x8   :  { %p1165_p2 = pnand %p1163_p1, %p1160_p0 }
   0xa   :  { %1168 = shalt.err (!%p1165_p2)
}
   0xb   :  { %s1169_s14 = scalar_lea.vmem %s35_s28, 2048  ;;  %p1174_p4 = scmp.lt.s32.totalorder %s35_s28, %s35_s28 }
   0xc   :  { %p1170_p3 = scmp.ne.s32.totalorder %s35_s28, %s1169_s14  ;;  %p1175_p5 = scmp.lt.s32.totalorder %s1169_s14, %s1169_s14 }
   0xe   :  { %p1176_p6 = por %p1175_p5, %p1174_p4 }
  0x10   :  { %p1177_p7 = pnand %p1176_p6, %p1170_p3 }
  0x12   :  { %1180 = shalt.err (!%p1177_p7)
}
  0x13   :  { %s1302_s15 = smov 128   ;;  %s1303_s16 = smov 8  }
  0x14   :  { %40 = dma.hbm_to_vmem [thread:$0]  %s1708_s1, 2048, %s35_s28, [#allocation6], %s1302_s15, %s1302_s15, %s1303_s16  }
  0x15   :  { %s1304_s19 = smov [#allocation2]   ;;  %s1305_s21 = smov [#allocation7]  }
  0x16   :  { %s25_s20 = sshll.u32 %s1304_s19, 4  ;;  %s46_s22 = sshll.u32 %s1305_s21, 4  ;;  %s26_s20 = int_to_ptr.vmem [resolvable:$true] %s25_s20  ;;  %s47_s22 = int_to_ptr.vmem [resolvable:$true] %s46_s22 }
  0x17   :  { %s1181_s25 = scalar_lea.hbm %s1707_s0, 128 }
  0x18   :  { %p1182_p8 = scmp.ne.s32.totalorder %s1707_s0, %s1181_s25  ;;  %p1185_p9 = scmp.lt.u32.totalorder %s1181_s25, %s1707_s0 }
  0x1a   :  { %p1187_p10 = pnand %p1185_p9, %p1182_p8 }
  0x1c   :  { %1190 = shalt.err (!%p1187_p10)
}
  0x1d   :  { %s1191_s1 = scalar_lea.vmem %s26_s20, 128  ;;  %p1196_p12 = scmp.lt.s32.totalorder %s26_s20, %s26_s20 }
  0x1e   :  { %p1192_p11 = scmp.ne.s32.totalorder %s26_s20, %s1191_s1  ;;  %p1197_p13 = scmp.lt.s32.totalorder %s1191_s1, %s1191_s1 }
  0x20   :  { %p1198_p0 = por %p1197_p13, %p1196_p12 }
  0x22   :  { %p1199_p1 = pnand %p1198_p0, %p1192_p11 }
  0x24   :  { %1202 = shalt.err (!%p1199_p1)
}
  0x25   :  { %28 = dma.hbm_to_vmem [thread:$0]  %s1707_s0, 128, %s26_s20, [#allocation3]  }
  0x26   :  { %s1203_s12 = scalar_lea.hbm %s1709_s2, 2048 }
  0x27   :  { %p1204_p2 = scmp.ne.s32.totalorder %s1709_s2, %s1203_s12  ;;  %p1207_p3 = scmp.lt.u32.totalorder %s1203_s12, %s1709_s2 }
  0x29   :  { %p1209_p4 = pnand %p1207_p3, %p1204_p2 }
  0x2b   :  { %1212 = shalt.err (!%p1209_p4)
}
  0x2c   :  { %s1213_s19 = scalar_lea.vmem %s47_s22, 2048  ;;  %p1218_p6 = scmp.lt.s32.totalorder %s47_s22, %s47_s22 }
  0x2d   :  { %p1214_p5 = scmp.ne.s32.totalorder %s47_s22, %s1213_s19  ;;  %p1219_p7 = scmp.lt.s32.totalorder %s1213_s19, %s1213_s19 }
  0x2f   :  { %p1220_p8 = por %p1219_p7, %p1218_p6 }
  0x31   :  { %p1221_p9 = pnand %p1220_p8, %p1214_p5 }
  0x33   :  { %1224 = shalt.err (!%p1221_p9)
}
  0x34   :  { %52 = dma.hbm_to_vmem [thread:$0]  %s1709_s2, 2048, %s47_s22, [#allocation6], %s1302_s15, %s1302_s15, %s1303_s16  }
  0x35   :  { %s1306_s21 = smov [#allocation8]   ;;  %s1225_s26 = scalar_lea.hbm %s1710_s3, 2048 }
  0x36   :  { %s58_s23 = sshll.u32 %s1306_s21, 4  ;;  %p1226_p10 = scmp.ne.s32.totalorder %s1710_s3, %s1225_s26  ;;  %s59_s23 = int_to_ptr.vmem [resolvable:$true] %s58_s23 }
  0x37   :  { %p1229_p11 = scmp.lt.u32.totalorder %s1225_s26, %s1710_s3 }
  0x39   :  { %p1231_p12 = pnand %p1229_p11, %p1226_p10 }
  0x3b   :  { %1234 = shalt.err (!%p1231_p12)
}
  0x3c   :  { %s1235_s28 = scalar_lea.vmem %s59_s23, 2048  ;;  %p1240_p0 = scmp.lt.s32.totalorder %s59_s23, %s59_s23 }
  0x3d   :  { %p1236_p13 = scmp.ne.s32.totalorder %s59_s23, %s1235_s28  ;;  %p1241_p1 = scmp.lt.s32.totalorder %s1235_s28, %s1235_s28 }
  0x3f   :  { %p1242_p2 = por %p1241_p1, %p1240_p0 }
  0x41   :  { %p1243_p3 = pnand %p1242_p2, %p1236_p13 }
  0x43   :  { %1246 = shalt.err (!%p1243_p3)
}
  0x44   :  { %64 = dma.hbm_to_vmem [thread:$0]  %s1710_s3, 2048, %s59_s23, [#allocation9], %s1302_s15, %s1302_s15, %s1303_s16  }
  0x45   :  { %1291 = dma.done.wait [#allocation3], 128  }
  0x46   :  { %1292 = vsyncadd [#allocation3], 4294967168 }
  0x47   :  { %1293 = dma.done.wait [#allocation6], 4096  }
  0x48   :  { %1294 = vsyncadd [#allocation6], 4294963200 }
  0x49   :  { %1295 = dma.done.wait [#allocation9], 2048  }
  0x4a   :  { %1296 = vsyncadd [#allocation9], 4294965248  ;;  %v1307_v0 = vmov 0.0|0.0   ;;  %v1415_v1 = vld [vmem:[#allocation7] sm:$0xff]  ;;  %v1417_v2 = vld [vmem:[#allocation7 + $0x8] sm:$0xff]  ;;  %vm1308_vm10 = vmmov 0  }
  0x4b   :  { %1036 = vmatprep.subr.bf16.mxu0 %v1307_v0  ;;  %v136_v3 = vand.u32 2147483647, %v1415_v1  ;;  %v137_v4 = vand.u32 2147483647, %v1417_v2  ;;  %v1421_v5 = vld [vmem:[#allocation7 + $0x10] sm:$0xff]  ;;  %v1423_v7 = vld [vmem:[#allocation7 + $0x18] sm:$0xff] }
  0x4c   :  { %v138_v8 = vand.u32 2147483647, %v1421_v5  ;;  %v139_v10 = vand.u32 2147483647, %v1423_v7  ;;  %v1427_v13 = vld [vmem:[#allocation7 + $0x20] sm:$0xff]  ;;  %v1429_v14 = vld [vmem:[#allocation7 + $0x28] sm:$0xff] }
  0x4d   :  { %v152_v6 = vsub.f32 0.0, %v136_v3  ;;  %v153_v9 = vsub.f32 0.0, %v137_v4  ;;  %v140_v18 = vand.u32 2147483647, %v1427_v13  ;;  %v141_v19 = vand.u32 2147483647, %v1429_v14 }
  0x4e   :  { %v154_v12 = vsub.f32 0.0, %v138_v8  ;;  %v155_v16 = vsub.f32 0.0, %v139_v10  ;;  %v1433_v21 = vld [vmem:[#allocation7 + $0x30] sm:$0xff]  ;;  %v1435_v24 = vld [vmem:[#allocation7 + $0x38] sm:$0xff]  ;;  %v1439_v29 = vld [vmem:[#allocation7 + $0x40] sm:$0xff]  ;;  %v344_v37 = vmax.f32 %v1415_v1, 0.0 }
  0x4f   :  { %v168_v11 = vmul.f32 1.442695, %v152_v6  ;;  %v170_v15 = vmul.f32 1.442695, %v153_v9  ;;  %v156_v22 = vsub.f32 0.0, %v140_v18  ;;  %v157_v23 = vsub.f32 0.0, %v141_v19 }
  0x50   :  { %v172_v17 = vmul.f32 1.442695, %v154_v12  ;;  %v174_v20 = vmul.f32 1.442695, %v155_v16  ;;  %v142_v25 = vand.u32 2147483647, %v1433_v21 }
  0x51   :  { %1079 = vpow2.f32 %v168_v11  ;;  %v143_v26 = vand.u32 2147483647, %v1435_v24  ;;  %v176_v27 = vmul.f32 1.442695, %v156_v22  ;;  %v178_v28 = vmul.f32 1.442695, %v157_v23 }
  0x52   :  { %1081 = vpow2.f32 %v170_v15  ;;  %v158_v30 = vsub.f32 0.0, %v142_v25  ;;  %v1441_v32 = vld [vmem:[#allocation7 + $0x48] sm:$0xff]  ;;  %v144_v33 = vand.u32 2147483647, %v1439_v29  ;;  %v1446_v39 = vld [vmem:[#allocation7 + $0x50] sm:$0xff]  ;;  %v345_v40 = vmax.f32 %v1417_v2, 0.0 }
  0x53   :  { %1083 = vpow2.f32 %v172_v17  ;;  %v159_v31 = vsub.f32 0.0, %v143_v26  ;;  %v145_v36 = vand.u32 2147483647, %v1441_v32  ;;  %v346_v41 = vmax.f32 %v1421_v5, 0.0  ;;  %v1453_v51 = vld [vmem:[#allocation7 + $0x58] sm:$0xff]  ;;  %v119_v10 = vld [vmem:[#allocation8 + $0x10] sm:$0xff] }
  0x54   :  { %1085 = vpow2.f32 %v174_v20  ;;  %v180_v34 = vmul.f32 1.442695, %v158_v30  ;;  %v160_v38 = vsub.f32 0.0, %v144_v33  ;;  %v347_v42 = vmax.f32 %v1423_v7, 0.0  ;;  %v86_v19 = vld [vmem:[#allocation5 + $0x8] sm:$0xff] }
  0x55   :  { %1087 = vpow2.f32 %v176_v27  ;;  %v182_v35 = vmul.f32 1.442695, %v159_v31  ;;  %v348_v44 = vmax.f32 %v1427_v13, 0.0  ;;  %v349_v45 = vmax.f32 %v1429_v14, 0.0 }
  0x56   :  { %1089 = vpow2.f32 %v178_v28  ;;  %v184_v46 = vmul.f32 1.442695, %v160_v38  ;;  %v161_v50 = vsub.f32 0.0, %v145_v36  ;;  %v146_v52 = vand.u32 2147483647, %v1446_v39 }
  0x57   :  { %1091 = vpow2.f32 %v180_v34  ;;  %v350_v59 = vmax.f32 %v1433_v21, 0.0  ;;  %v351_v60 = vmax.f32 %v1435_v24, 0.0  ;;  %v147_v63 = vand.u32 2147483647, %v1453_v51 }
  0x58   :  { %1093 = vpow2.f32 %v182_v35  ;;  %v186_v4 = vmul.f32 1.442695, %v161_v50  ;;  %v1459_v6 = vsub.f32 0.0, %v146_v52 }
  0x59   :  { %1095 = vpow2.f32 %v184_v46 }
  0x5b   :  { %v1080_v43 = vpop.eup %1079 }
  0x5c   :  { %v1082_v47 = vpop.eup %1081  ;;  %v200_v48 = vadd.f32 1.0, %v1080_v43  ;;  %v203_v49 = vmul.f32 -0.5, %v1080_v43  ;;  %v206_v54 = vand.u32 2147483647, %v1080_v43 }
  0x5d   :  { %v1084_v53 = vpop.eup %1083  ;;  %v209_v55 = vadd.f32 1.0, %v1082_v47  ;;  %v212_v56 = vmul.f32 -0.5, %v1082_v47  ;;  %v215_v61 = vand.u32 2147483647, %v1082_v47 }
  0x5e   :  { %v1086_v57 = vpop.eup %1085  ;;  %1097 = vlog2.f32 %v200_v48  ;;  %v218_v58 = vadd.f32 1.0, %v1084_v53  ;;  %v221_v62 = vmul.f32 -0.5, %v1084_v53  ;;  %v204_v9 = vadd.f32 1.0, %v203_v49 }
  0x5f   :  { %1099 = vlog2.f32 %v209_v55  ;;  %v227_v3 = vadd.f32 1.0, %v1086_v57  ;;  %v1088_v8 = vpop.eup %1087  ;;  %vm1461_vm0 = vcmp.lt.f32.partialorder %v206_v54, 0.0004427343  ;;  %v213_v11 = vadd.f32 1.0, %v212_v56 }
  0x60   :  { %1101 = vlog2.f32 %v218_v58  ;;  %v230_v12 = vmul.f32 -0.5, %v1086_v57  ;;  %v1090_v15 = vpop.eup %1089  ;;  %v224_v16 = vand.u32 2147483647, %v1084_v53  ;;  %v236_v17 = vadd.f32 1.0, %v1088_v8 }
  0x61   :  { %1103 = vlog2.f32 %v227_v3  ;;  %v239_v18 = vmul.f32 -0.5, %v1088_v8  ;;  %vm1465_vm1 = vcmp.lt.f32.partialorder %v215_v61, 0.0004427343  ;;  %v222_v20 = vadd.f32 1.0, %v221_v62  ;;  %v1092_v25 = vpop.eup %1091 }
  0x62   :  { %v231_v22 = vadd.f32 1.0, %v230_v12  ;;  %v233_v23 = vand.u32 2147483647, %v1086_v57  ;;  %1105 = vlog2.f32 %v236_v17  ;;  %v242_v26 = vand.u32 2147483647, %v1088_v8  ;;  %v1469_v30 = vpop.eup %1093 }
  0x63   :  { %v245_v27 = vadd.f32 1.0, %v1090_v15  ;;  %v248_v28 = vmul.f32 -0.5, %v1090_v15  ;;  %v205_v31 = vmul.f32 %v1080_v43, %v204_v9  ;;  %v214_v33 = vmul.f32 %v1082_v47, %v213_v11  ;;  %v1475_v48 = vpop.eup %1095 }
  0x64   :  { %v251_v34 = vand.u32 2147483647, %v1090_v15  ;;  %v254_v35 = vadd.f32 1.0, %v1092_v25  ;;  %vm1471_vm2 = vcmp.lt.f32.partialorder %v224_v16, 0.0004427343  ;;  %v240_v38 = vadd.f32 1.0, %v239_v18 }
  0x65   :  { %1107 = vlog2.f32 %v245_v27  ;;  %v257_v46 = vmul.f32 -0.5, %v1092_v25  ;;  %v223_v49 = vmul.f32 %v1084_v53, %v222_v20  ;;  %v249_v50 = vadd.f32 1.0, %v248_v28  ;;  %v1492_v16 = vld [vmem:[#allocation8] sm:$0xff] }
  0x66   :  { %1109 = vlog2.f32 %v254_v35  ;;  %v263_v52 = vadd.f32 1.0, %v1469_v30  ;;  %v232_v55 = vmul.f32 %v1086_v57, %v231_v22  ;;  %vm1478_vm3 = vcmp.lt.f32.partialorder %v233_v23, 0.0004427343  ;;  %v118_v23 = vld [vmem:[#allocation8 + $0x8] sm:$0xff]  ;;  %v85_v28 = vld [vmem:[#allocation5] sm:$0xff] }
  0x67   :  { %vm1482_vm4 = vcmp.lt.f32.partialorder %v242_v26, 0.0004427343  ;;  %v266_v56 = vmul.f32 -0.5, %v1469_v30  ;;  %vm1487_vm5 = vcmp.lt.f32.partialorder %v251_v34, 0.0004427343  ;;  %v272_v62 = vadd.f32 1.0, %v1475_v48 }
  0x68   :  { %v1098_v54 = vpop.eup %1097  ;;  %1111 = vlog2.f32 %v263_v52  ;;  %v241_v9 = vmul.f32 %v1088_v8, %v240_v38  ;;  %v258_v11 = vadd.f32 1.0, %v257_v46  ;;  %v260_v12 = vand.u32 2147483647, %v1092_v25 }
  0x69   :  { %v1100_v58 = vpop.eup %1099  ;;  %v202_v61 = vmul.f32 0.6931472, %v1098_v54  ;;  %v250_v20 = vmul.f32 %v1090_v15, %v249_v50  ;;  %1113 = vpow2.f32 %v186_v4  ;;  %v267_v8 = vadd.f32 1.0, %v266_v56 }
  0x6a   :  { %v1102_v57 = vpop.eup %1101  ;;  %v211_v3 = vmul.f32 0.6931472, %v1100_v58  ;;  %1115 = vlog2.f32 %v272_v62  ;;  %vm1511_vm6 = vcmp.lt.f32.partialorder %v260_v12, 0.0004427343  ;;  %v188_v43 = vmul.f32 1.442695, %v1459_v6 }
  0x6b   :  { %v208_v17 = vsel %vm1461_vm0, %v205_v31, %v202_v61  ;;  %v220_v18 = vmul.f32 0.6931472, %v1102_v57  ;;  %v1104_v22 = vpop.eup %1103  ;;  %v269_v31 = vand.u32 2147483647, %v1469_v30  ;;  %v87_v62 = vld [vmem:[#allocation5 + $0x10] sm:$0xff]  ;;  %v88_v57 = vld [vmem:[#allocation5 + $0x18] sm:$0xff] }
  0x6c   :  { %v217_v26 = vsel %vm1465_vm1, %v214_v33, %v211_v3  ;;  %v1500_v27 = vadd.f32 %v344_v37, %v208_v17  ;;  %v229_v4 = vmul.f32 0.6931472, %v1104_v22  ;;  %v1106_v35 = vpop.eup %1105  ;;  %v259_v33 = vmul.f32 %v1092_v25, %v258_v11  ;;  %v121_v12 = vld [vmem:[#allocation8 + $0x20] sm:$0xff]  ;;  %v122_v17 = vld [vmem:[#allocation8 + $0x28] sm:$0xff] }
  0x6d   :  { %v361_v34 = vadd.f32 %v345_v40, %v217_v26  ;;  %v226_v15 = vsel %vm1471_vm2, %v223_v49, %v220_v18  ;;  %v120_v40 = vld [vmem:[#allocation8 + $0x18] sm:$0xff]  ;;  %v238_v46 = vmul.f32 0.6931472, %v1106_v35  ;;  %v275_v49 = vmul.f32 -0.5, %v1475_v48  ;;  %v1543_v26 = vld [vmem:[#allocation7 + $0x60] sm:$0xff]  ;;  %v90_v35 = vld [vmem:[#allocation5 + $0x28] sm:$0xff] }
  0x6e   :  { %v391_v1 = vmul.f32 %v1500_v27, %v1492_v16  ;;  %v362_v37 = vadd.f32 %v346_v41, %v226_v15  ;;  %v235_v36 = vsel %vm1478_vm3, %v232_v55, %v229_v4  ;;  %v268_v41 = vmul.f32 %v1469_v30, %v267_v8 }
  0x6f   :  { %v392_v2 = vmul.f32 %v361_v34, %v118_v23  ;;  %v1108_v50 = vpop.eup %1107  ;;  %v363_v54 = vadd.f32 %v347_v42, %v235_v36  ;;  %v244_v58 = vsel %vm1482_vm4, %v241_v9, %v238_v46  ;;  %v163_v42 = vsub.f32 0.0, %v147_v63  ;;  %v124_v46 = vld [vmem:[#allocation8 + $0x38] sm:$0xff] }
  0x70   :  { %v407_v52 = vadd.f32 %v391_v1, %v85_v28  ;;  %v393_v5 = vmul.f32 %v362_v37, %v119_v10  ;;  %v1110_v25 = vpop.eup %1109  ;;  %v247_v61 = vmul.f32 0.6931472, %v1108_v50  ;;  %v364_v7 = vadd.f32 %v348_v44, %v244_v58  ;;  %v1553_v37 = vld [vmem:[#allocation7 + $0x68] sm:$0xff] }
  0x71   :  { %v408_v56 = vadd.f32 %v392_v2, %v86_v19  ;;  %v394_v3 = vmul.f32 %v363_v54, %v120_v40  ;;  %v256_v9 = vmul.f32 0.6931472, %v1110_v25  ;;  %1117 = vpow2.f32 %v188_v43  ;;  %v123_v2 = vld [vmem:[#allocation8 + $0x30] sm:$0xff]  ;;  %v92_v25 = vld [vmem:[#allocation5 + $0x38] sm:$0xff] }
  0x72   :  { %v1524_v55 = vmul.f32 %v407_v52, %v407_v52  ;;  %v1112_v30 = vpop.eup %1111  ;;  %v253_v47 = vsel %vm1487_vm5, %v250_v20, %v247_v61  ;;  %vm1535_vm7 = vcmp.lt.f32.partialorder %v269_v31, 0.0004427343  ;;  %v276_v44 = vadd.f32 1.0, %v275_v49  ;;  %v89_v31 = vld [vmem:[#allocation5 + $0x20] sm:$0xff] }
  0x73   :  { %v1037_v11 = vpack.c.bf16 %v408_v56, %v407_v52  ;;  %v365_v18 = vadd.f32 %v349_v45, %v253_v47  ;;  %v1539_v63 = vpop.eup %1113  ;;  %v409_v22 = vadd.f32 %v393_v5, %v87_v62  ;;  %v410_v23 = vadd.f32 %v394_v3, %v88_v57  ;;  %v1573_v57 = vld [vmem:[#allocation7 + $0x70] sm:$0xff]  ;;  %v1575_v3 = vld [vmem:[#allocation7 + $0x78] sm:$0xff] }
  0x74   :  { %v760_v6 = vmul.f32 -79999.5, %v1524_v55  ;;  %v262_v53 = vsel %vm1511_vm6, %v259_v33, %v256_v9  ;;  %v265_v20 = vmul.f32 0.6931472, %v1112_v30  ;;  %v1116_v8 = vpop.eup %1115  ;;  %v395_v14 = vmul.f32 %v364_v7, %v121_v12  ;;  %v1586_v9 = vld [vmem:[%s1712_s5] sm:$0x1] }
  0x75   :  { %1038 = vmatpush3.bf16.xpose.msra.mxu0 %v1037_v11  ;;  %v278_v45 = vand.u32 2147483647, %v1475_v48  ;;  %v396_v34 = vmul.f32 %v365_v18, %v122_v17  ;;  %v281_v15 = vadd.f32 1.0, %v1539_v63  ;;  %v190_v4 = vmul.f32 1.442695, %v163_v42  ;;  %v125_v17 = vld [vmem:[#allocation8 + $0x40] sm:$0xff] }
  0x76   :  { %v776_v28 = vmul.f32 1.442695, %v760_v6  ;;  %1039 = vmatprep.subr.bf16.mxu0 %v1307_v0  ;;  %v271_v10 = vsel %vm1535_vm7, %v268_v41, %v265_v20  ;;  %v366_v19 = vadd.f32 %v350_v59, %v262_v53  ;;  %v277_v1 = vmul.f32 %v1475_v48, %v276_v44  ;;  %v91_v41 = vld [vmem:[#allocation5 + $0x30] sm:$0xff] }
  0x77   :  { %v148_v33 = vand.u32 2147483647, %v1543_v26  ;;  %v1040_v38 = vpack.c.bf16 %v410_v23, %v409_v22  ;;  %v367_v40 = vadd.f32 %v351_v60, %v271_v10  ;;  %v274_v36 = vmul.f32 0.6931472, %v1116_v8  ;;  %v127_v23 = vld [vmem:[#allocation8 + $0x50] sm:$0xff] }
  0x78   :  { %1119 = vpow2.f32 %v776_v28  ;;  %vm1558_vm8 = vcmp.lt.f32.partialorder %v278_v45, 0.0004427343  ;;  %v284_v21 = vmul.f32 -0.5, %v1539_v63  ;;  %v426_v59 = vlaneseq }
  0x79   :  { %1121 = vlog2.f32 %v281_v15  ;;  %v411_v48 = vadd.f32 %v395_v14, %v89_v31  ;;  %v412_v50 = vadd.f32 %v396_v34, %v90_v35  ;;  %v149_v52 = vand.u32 2147483647, %v1553_v37 }
  0x7a   :  { %1123 = vpow2.f32 %v190_v4  ;;  %v397_v54 = vmul.f32 %v366_v19, %v123_v2  ;;  %v352_v5 = vmax.f32 %v1439_v29, 0.0  ;;  %v164_v24 = vsub.f32 0.0, %v148_v33 }
  0x7b   :  { %v1565_v60 = vpop.eup %1117  ;;  %v398_v56 = vmul.f32 %v367_v40, %v124_v46  ;;  %v280_v58 = vsel %vm1558_vm8, %v277_v1, %v274_v36  ;;  %v165_v61 = vsub.f32 0.0, %v149_v52  ;;  %1125 = vlog2.f32 %v1500_v27 }
  0x7c   :  { %v285_v43 = vadd.f32 1.0, %v284_v21  ;;  %v287_v62 = vand.u32 2147483647, %v1539_v63  ;;  %v290_v29 = vadd.f32 1.0, %v1565_v60  ;;  %v1043_v7 = vpack.c.bf16 %v412_v50, %v411_v48  ;;  %v93_v50 = vld [vmem:[#allocation5 + $0x40] sm:$0xff] }
  0x7d   :  { %1041 = vmatpush3.bf16.xpose.msra.mxu0 %v1040_v38  ;;  %v192_v42 = vmul.f32 1.442695, %v164_v24  ;;  %v194_v30 = vmul.f32 1.442695, %v165_v61  ;;  %v1578_v11 = vand.u32 127, %v426_v59  ;;  %v1580_v12 = vadd.f32 %v397_v54, %v91_v41  ;;  %v94_v41 = vld [vmem:[#allocation5 + $0x48] sm:$0xff] }
  0x7e   :  { %1042 = vmatprep.subr.bf16.mxu0 %v1307_v0  ;;  %v368_v27 = vadd.f32 %v352_v5, %v280_v58  ;;  %1127 = vlog2.f32 %v290_v29  ;;  %v293_v47 = vmul.f32 -0.5, %v1565_v60  ;;  %v414_v6 = vadd.f32 %v398_v56, %v92_v25 }
  0x7f   :  { %1129 = vpow2.f32 %v192_v42  ;;  %v150_v18 = vand.u32 2147483647, %v1573_v57  ;;  %v151_v13 = vand.u32 2147483647, %v1575_v3  ;;  %v286_v22 = vmul.f32 %v1539_v63, %v285_v43 }
  0x80   :  { %vm1591_vm9 = vcmp.lt.f32.partialorder %v287_v62, 0.0004427343  ;;  %v353_v53 = vmax.f32 %v1441_v32, 0.0  ;;  %1131 = vpow2.f32 %v194_v30  ;;  %v376_v45 = vand.u32 2147483647, %v1586_v9  ;;  %v126_v32 = vld [vmem:[#allocation8 + $0x48] sm:$0xff] }
  0x81   :  { %v166_v28 = vsub.f32 0.0, %v150_v18  ;;  %v167_v14 = vsub.f32 0.0, %v151_v13  ;;  %v399_v10 = vmul.f32 %v368_v27, %v125_v17  ;;  %v294_v15 = vadd.f32 1.0, %v293_v47 }
  0x82   :  { %v1120_v44 = vpop.eup %1119  ;;  %v621_v4 = vmul.f32 %v1492_v16, %v1492_v16  ;;  %v1046_v31 = vpack.c.bf16 %v414_v6, %v1580_v12  ;;  %v296_v33 = vand.u32 2147483647, %v1565_v60  ;;  %v377_v16 = vsub.f32 0.0, %v376_v45 }
  0x83   :  { %v1122_v20 = vpop.eup %1121  ;;  %v808_v8 = vmul.f32 79.78846, %v1120_v44  ;;  %v196_v19 = vmul.f32 1.442695, %v166_v28  ;;  %v198_v2 = vmul.f32 1.442695, %v167_v14  ;;  %v295_v46 = vmul.f32 %v1565_v60, %v294_v15 }
  0x84   :  { %v283_v34 = vmul.f32 0.6931472, %v1122_v20  ;;  %v1124_v63 = vpop.eup %1123  ;;  %v637_v21 = vmul.f32 0.5, %v621_v4  ;;  %v1309_v48 = vmov 0.0   ;;  %v378_v5 = vmul.f32 1.442695, %v377_v16 }
  0x85   :  { %1044 = vmatpush3.bf16.xpose.msra.mxu0 %v1043_v7  ;;  %v824_v35 = vadd.f32 0.19947115, %v808_v8  ;;  %v299_v38 = vadd.f32 1.0, %v1124_v63  ;;  %v1126_v40 = vpop.eup %1125  ;;  %1033 = vmatprep.mubr.msk.f32.mxu0 %vm1308_vm10, %v1309_v48  ;;  %v302_v54 = vmul.f32 -0.5, %v1124_v63  ;;  %vm1605_vm11 = vcmp.lt.f32.partialorder %v296_v33, 0.0004427343 }
  0x86   :  { %1045 = vmatprep.subr.bf16.mxu0 %v1307_v0  ;;  %v289_v1 = vsel %vm1591_vm9, %v286_v22, %v283_v34  ;;  %v574_v49 = vmul.f32 0.6931472, %v1126_v40  ;;  %vm554_vm12 = vcmp.lt.s32.totalorder %v1578_v11, 32  ;;  %v415_v43 = vadd.f32 %v399_v10, %v93_v50 }
  0x87   :  { %v369_v36 = vadd.f32 %v353_v53, %v289_v1  ;;  %1133 = vlog2.f32 %v824_v35  ;;  %v354_v62 = vmax.f32 %v1446_v39, 0.0  ;;  %v303_v12 = vadd.f32 1.0, %v302_v54 }
  0x88   :  { %1135 = vlog2.f32 %v299_v38  ;;  %v1128_v24 = vpop.eup %1127  ;;  %v605_v56 = vsub.f32 -0.9189385, %v574_v49  ;;  %v305_v47 = vand.u32 2147483647, %v1124_v63  ;;  %v744_v13 = vmul.f32 -0.5, %v1524_v55 }
  0x89   :  { %v400_v52 = vmul.f32 %v369_v36, %v126_v32  ;;  %1137 = vpow2.f32 %v196_v19  ;;  %v1130_v60 = vpop.eup %1129  ;;  %v292_v58 = vmul.f32 0.6931472, %v1128_v24  ;;  %v304_v53 = vmul.f32 %v1124_v63, %v303_v12  ;;  %v128_v63 = vld [vmem:[#allocation8 + $0x58] sm:$0xff] }
  0x8a   :  { %1139 = vpow2.f32 %v198_v2  ;;  %v1610_v61 = vpop.eup %1131  ;;  %v308_v29 = vadd.f32 1.0, %v1130_v60  ;;  %v653_v7 = vsub.f32 %v605_v56, %v637_v21  ;;  %v311_v6 = vmul.f32 -0.5, %v1130_v60 }
  0x8b   :  { %1141 = vpow2.f32 %v378_v5  ;;  %v416_v42 = vadd.f32 %v400_v52, %v94_v41  ;;  %v298_v30 = vsel %vm1605_vm11, %v295_v46, %v292_v58  ;;  %v317_v27 = vadd.f32 1.0, %v1610_v61  ;;  %v96_v46 = vld [vmem:[#allocation5 + $0x58] sm:$0xff] }
  0x8c   :  { %1143 = vlog2.f32 %v308_v29  ;;  %v320_v17 = vmul.f32 -0.5, %v1610_v61  ;;  %v675_v39 = vsel %vm554_vm12, %v653_v7, 0.0  ;;  %v370_v18 = vadd.f32 %v354_v62, %v298_v30  ;;  %v130_v30 = vld [vmem:[#allocation8 + $0x68] sm:$0xff] }
  0x8d   :  { %1047 = vmatpush3.bf16.xpose.msra.mxu0 %v1046_v31  ;;  %1145 = vlog2.f32 %v317_v27  ;;  %706 = vadd.xlane.f32.xlu0 %v675_v39  ;;  %v1049_v22 = vpack.c.bf16 %v416_v42, %v415_v43  ;;  %v355_v20 = vmax.f32 %v1453_v51, 0.0  ;;  %vm1622_vm13 = vcmp.lt.f32.partialorder %v305_v47, 0.0004427343  ;;  %v95_v51 = vld [vmem:[#allocation5 + $0x50] sm:$0xff]  ;;  %v98_v39 = vld [vmem:[#allocation5 + $0x68] sm:$0xff] }
  0x8e   :  { %1048 = vmatprep.subr.bf16.mxu0 %v1307_v0  ;;  %v314_v14 = vand.u32 2147483647, %v1130_v60  ;;  %v312_v15 = vadd.f32 1.0, %v311_v6  ;;  %v321_v4 = vadd.f32 1.0, %v320_v17  ;;  %v401_v55 = vmul.f32 %v370_v18, %v127_v23  ;;  %v97_v6 = vld [vmem:[#allocation5 + $0x60] sm:$0xff] }
  0x8f   :  { %v323_v33 = vand.u32 2147483647, %v1610_v61  ;;  %v356_v38 = vmax.f32 %v1543_v26, 0.0  ;;  %v357_v56 = vmax.f32 %v1553_v37, 0.0  ;;  %vm572_vm3 = vcmp.lt.s32.totalorder %v1578_v11, 8 }
  0x90   :  { %vm1636_vm14 = vcmp.lt.f32.partialorder %v314_v14, 0.0004427343  ;;  %v313_v49 = vmul.f32 %v1130_v60, %v312_v15  ;;  %v322_v21 = vmul.f32 %v1610_v61, %v321_v4  ;;  %v417_v52 = vadd.f32 %v401_v55, %v95_v51  ;;  %v129_v61 = vld [vmem:[#allocation8 + $0x60] sm:$0xff] }
  0x91   :  { %v1134_v44 = vpop.eup %1133  ;;  %vm1645_vm15 = vcmp.lt.f32.partialorder %v323_v33, 0.0004427343  ;;  %v359_v4 = vmax.f32 %v1575_v3, 0.0  ;;  %v389_v33 = vmax.f32 %v1586_v9, 0.0  ;;  %v100_v3 = vld [vmem:[#allocation5 + $0x78] sm:$0xff]  ;;  %vm716_vm4 = vcmask 1040384  }
  0x92   :  { %v1136_v8 = vpop.eup %1135  ;;  %v841_v45 = vmul.f32 0.6931472, %v1134_v44  ;;  %v133_v9 = vld [vmem:[%s1711_s4] sm:$0x1]  ;;  %s1310_s4 = smov [#allocation10]  }
  0x93   :  { %v1138_v34 = vpop.eup %1137  ;;  %v301_v10 = vmul.f32 0.6931472, %v1136_v8 }
  0x94   :  { %v1626_v31 = vpop.eup %1139  ;;  %v872_v35 = vadd.f32 %v841_v45, %v744_v13  ;;  %v326_v19 = vadd.f32 1.0, %v1138_v34  ;;  %v329_v48 = vmul.f32 -0.5, %v1138_v34  ;;  %v332_v29 = vand.u32 2147483647, %v1138_v34 }
  0x95   :  { %v1628_v32 = vpop.eup %1141  ;;  %1050 = vmatpush3.bf16.xpose.msra.mxu0 %v1049_v22  ;;  %v307_v1 = vsel %vm1622_vm13, %v304_v53, %v301_v10  ;;  %v335_v2 = vadd.f32 1.0, %v1626_v31  ;;  %v338_v54 = vmul.f32 -0.5, %v1626_v31  ;;  %v341_v17 = vand.u32 2147483647, %v1626_v31 }
  0x96   :  { %1051 = vmatprep.subr.bf16.mxu0 %v1307_v0  ;;  %v371_v40 = vadd.f32 %v355_v20, %v307_v1  ;;  %v898_v16 = vsel %vm554_vm12, %v872_v35, 0.0  ;;  %1147 = vlog2.f32 %v326_v19  ;;  %v1144_v26 = vpop.eup %1143  ;;  %v380_v5 = vadd.f32 1.0, %v1628_v32 }
  0x97   :  { %929 = vadd.xlane.f32.xlu1 %v898_v16  ;;  %1149 = vlog2.f32 %v335_v2  ;;  %v1146_v24 = vpop.eup %1145  ;;  %v310_v41 = vmul.f32 0.6931472, %v1144_v26  ;;  %v330_v62 = vadd.f32 1.0, %v329_v48  ;;  %v383_v7 = vmul.f32 -0.5, %v1628_v32 }
  0x98   :  { %v402_v50 = vmul.f32 %v371_v40, %v128_v63  ;;  %v319_v58 = vmul.f32 0.6931472, %v1146_v24  ;;  %1151 = vlog2.f32 %v380_v5  ;;  %v339_v47 = vadd.f32 1.0, %v338_v54  ;;  %v132_v63 = vld [vmem:[#allocation8 + $0x78] sm:$0xff] }
  0x99   :  { %v316_v43 = vsel %vm1636_vm14, %v313_v49, %v310_v41  ;;  %v331_v44 = vmul.f32 %v1138_v34, %v330_v62  ;;  %v358_v22 = vmax.f32 %v1573_v57, 0.0  ;;  %v384_v23 = vadd.f32 1.0, %v383_v7  ;;  %v131_v57 = vld [vmem:[#allocation8 + $0x70] sm:$0xff]  ;;  %v84_v41 = vld [vmem:[#allocation2] sm:$0xff] }
  0x9a   :  { %v418_v60 = vadd.f32 %v402_v50, %v96_v46  ;;  %v325_v12 = vsel %vm1645_vm15, %v322_v21, %v319_v58  ;;  %v372_v27 = vadd.f32 %v356_v38, %v316_v43  ;;  %vm1658_vm0 = vcmp.lt.f32.partialorder %v332_v29, 0.0004427343  ;;  %v99_v38 = vld [vmem:[#allocation5 + $0x70] sm:$0xff] }
  0x9b   :  { %v373_v37 = vadd.f32 %v357_v56, %v325_v12  ;;  %v340_v28 = vmul.f32 %v1626_v31, %v339_v47  ;;  %v386_v14 = vand.u32 2147483647, %v1628_v32  ;;  %vm342_vm1 = vcmp.lt.f32.partialorder %v341_v17, 0.0004427343 }
  0x9c   :  { %v1052_v42 = vpack.c.bf16 %v418_v60, %v417_v52  ;;  %v403_v18 = vmul.f32 %v372_v27, %v129_v61  ;;  %v385_v19 = vmul.f32 %v1628_v32, %v384_v23  ;;  %v135_v32 = vld [vmem:[%s1713_s6] sm:$0x1]  ;;  %s959_s6 = sshll.u32 %s1310_s4, 4  ;;  %s960_s6 = int_to_ptr.vmem [resolvable:$true] %s959_s6 }
  0x9d   :  { %v404_v13 = vmul.f32 %v373_v37, %v130_v30  ;;  %vm387_vm2 = vcmp.lt.f32.partialorder %v386_v14, 0.0004427343  ;;  %v672_v5 = vmul.f32 %v135_v32, %v135_v32  ;;  %s1247_s11 = scalar_lea.vmem %s960_s6, 128  ;;  %p1252_p5 = scmp.lt.s32.totalorder %s960_s6, %s960_s6 }
  0x9e   :  { %1053 = vmatpush3.bf16.xpose.msra.mxu0 %v1052_v42  ;;  %v419_v20 = vadd.f32 %v403_v18, %v97_v6  ;;  %p1248_p4 = scmp.ne.s32.totalorder %s960_s6, %s1247_s11  ;;  %p1253_p6 = scmp.lt.s32.totalorder %s1247_s11, %s1247_s11 }
  0x9f   :  { %1054 = vmatprep.subr.bf16.mxu0 %v1307_v0  ;;  %v420_v10 = vadd.f32 %v404_v13, %v98_v39  ;;  %v673_v60 = vmul.f32 0.5, %v672_v5 }
  0xa0   :  { %v1148_v53 = vpop.eup %1147  ;;  %p1254_p7 = por %p1253_p6, %p1252_p5 }
  0xa1   :  { %v1150_v45 = vpop.eup %1149  ;;  %v328_v15 = vmul.f32 0.6931472, %v1148_v53  ;;  %v1055_v55 = vpack.c.bf16 %v420_v10, %v419_v20 }
  0xa2   :  { %v337_v34 = vmul.f32 0.6931472, %v1150_v45  ;;  %v1152_v51 = vpop.eup %1151  ;;  %p1255_p8 = pnand %p1254_p7, %p1248_p4 }
  0xa3   :  { %v334_v35 = vsel %vm1658_vm0, %v331_v44, %v328_v15  ;;  %v382_v40 = vmul.f32 0.6931472, %v1152_v51 }
  0xa4   :  { %v343_v1 = vsel %vm342_vm1, %v340_v28, %v337_v34  ;;  %v374_v31 = vadd.f32 %v358_v22, %v334_v35 }
  0xa5   :  { %v375_v2 = vadd.f32 %v359_v4, %v343_v1  ;;  %v388_v46 = vsel %vm387_vm2, %v385_v19, %v382_v40 }
  0xa6   :  { %1056 = vmatpush3.bf16.xpose.msra.mxu0 %v1055_v55  ;;  %v405_v36 = vmul.f32 %v374_v31, %v131_v57  ;;  %v390_v21 = vadd.f32 %v389_v33, %v388_v46 }
  0xa7   :  { %1057 = vmatprep.subr.bf16.mxu0 %v1307_v0  ;;  %v406_v16 = vmul.f32 %v375_v2, %v132_v63  ;;  %v427_v2 = vshrl.u32 %v426_v59, 7 }
  0xa8   :  { %v421_v49 = vadd.f32 %v405_v36, %v99_v38  ;;  %v423_v26 = vmul.f32 %v390_v21, %v135_v32  ;;  %1153 = vlog2.f32 %v390_v21 }
  0xa9   :  { %v422_v48 = vadd.f32 %v406_v16, %v100_v3  ;;  %v428_v40 = vsub.s32 0, %v427_v2 }
  0xaa   :  { %v1676_v52 = vadd.f32 %v423_v26, %v133_v9 }
  0xab   :  { %v1058_v50 = vpack.c.bf16 %v422_v48, %v421_v49 }
  0xac   :  { %v888_v0 = vmul.f32 %v1676_v52, %v1676_v52  ;;  %v429_v3 = vrot.slane %v1676_v52, %v428_v40 }
  0xae   :  { %1059 = vmatpush3.bf16.xpose.msra.mxu0 %v1058_v50  ;;  %v890_v54 = vmul.f32 -79999.5, %v888_v0  ;;  %v889_v30 = vmul.f32 -0.5, %v888_v0 }
  0xb0   :  { %v891_v24 = vmul.f32 1.442695, %v890_v54 }
  0xb2   :  { %v1154_v25 = vpop.eup %1153  ;;  %1155 = vpow2.f32 %v891_v24 }
  0xb3   :  { %v670_v56 = vmul.f32 0.6931472, %v1154_v25 }
  0xb5   :  { %1034 = vmatmul.mubr.f32.vlgmr.msra.gmra.mrb[0].mxu0 %v84_v41  ;;  %v671_v58 = vsub.f32 -0.9189385, %v670_v56 }
  0xb7   :  { %v674_v61 = vsub.f32 %v671_v58, %v673_v60 }
  0xb9   :  { %v715_v43 = vsel %vm572_vm3, %v674_v61, 0.0 }
  0xba   :  { %v717_v62 = vsel %vm716_vm4, %v715_v43, 0.0 }
  0xbb   :  { %718 = vadd.xlane.f32.xlu0 %v717_v62 }
  0xbc   :  { %v1156_v29 = vpop.eup %1155 }
  0xbd   :  { %v893_v7 = vmul.f32 79.78846, %v1156_v29 }
  0xbf   :  { %v894_v42 = vadd.f32 0.19947115, %v893_v7 }
  0xc1   :  { %1157 = vlog2.f32 %v894_v42 }
  0xcb   :  { %v1158_v12 = vpop.eup %1157 }
  0xcc   :  { %v896_v27 = vmul.f32 0.6931472, %v1158_v12 }
  0xce   :  { %v897_v47 = vadd.f32 %v896_v27, %v889_v30 }
  0xd0   :  { %v938_v6 = vsel %vm572_vm3, %v897_v47, 0.0 }
  0xd1   :  { %v939_v37 = vsel %vm716_vm4, %v938_v6, 0.0 }
  0xd2   :  { %940 = vadd.xlane.f32.xlu1 %v939_v37 }
 0x11a   :  { %v707_v17 = vpop.xlane.xlu0 %706 }
 0x11b   :  { %v708_v39 = vrot.slane %v707_v17, 4 }
 0x11d   :  { %v709_v18 = vadd.f32 %v708_v39, %v707_v17 }
 0x11f   :  { %v710_v11 = vrot.slane %v709_v18, 2 }
 0x121   :  { %v711_v13 = vadd.f32 %v710_v11, %v709_v18 }
 0x123   :  { %v712_v44 = vrot.slane %v711_v13, 1 }
 0x124   :  { %v930_v23 = vpop.xlane.xlu1 %929 }
 0x125   :  { %v713_v22 = vadd.f32 %v712_v44, %v711_v13  ;;  %v931_v53 = vrot.slane %v930_v23, 4 }
 0x127   :  { %1060 = vpush %v713_v22  ;;  %v932_v20 = vadd.f32 %v931_v53, %v930_v23 }
 0x129   :  { %v933_v8 = vrot.slane %v932_v20, 2 }
 0x12b   :  { %v934_v45 = vadd.f32 %v933_v8, %v932_v20 }
 0x12d   :  { %v935_v4 = vrot.slane %v934_v45, 1 }
 0x12f   :  { %v936_v57 = vadd.f32 %v935_v4, %v934_v45 }
 0x148   :  { %v719_v28 = vpop.xlane.xlu0 %718 }
 0x149   :  { %v720_v14 = vrot.slane %v719_v28, 4 }
 0x14b   :  { %v721_v10 = vadd.f32 %v720_v14, %v719_v28 }
 0x14d   :  { %v722_v15 = vrot.slane %v721_v10, 2 }
 0x14f   :  { %v723_v34 = vadd.f32 %v722_v15, %v721_v10 }
 0x151   :  { %v724_v55 = vrot.slane %v723_v34, 1 }
 0x153   :  { %v725_v35 = vadd.f32 %v724_v55, %v723_v34 }
 0x155   :  { %1062 = vpush %v725_v35 }
 0x156   :  { %1064 = vpush %v936_v57 }
 0x15f   :  { %v941_v19 = vpop.xlane.xlu1 %940 }
 0x160   :  { %v942_v51 = vrot.slane %v941_v19, 4 }
 0x162   :  { %v943_v63 = vadd.f32 %v942_v51, %v941_v19 }
 0x164   :  { %v944_v1 = vrot.slane %v943_v63, 2 }
 0x166   :  { %v945_v31 = vadd.f32 %v944_v1, %v943_v63 }
 0x168   :  { %v946_v33 = vrot.slane %v945_v31, 1 }
 0x16a   :  { %v947_v38 = vadd.f32 %v946_v33, %v945_v31 }
 0x16c   :  { %1066 = vpush %v947_v38 }
 0x188   :  { %v497_v36 = vpop.f32.mrb[0].mxu0 }
 0x189   :  { %v498_v16 = vadd.f32 %v497_v36, %v429_v3  ;;  %v1035_v32 = vpop.f32.mrb[1].mxu0 }
 0x18b   :  { %501 = vst [vmem:[#allocation10] sm:$0xff] %v498_v16 }
 0x18c   :  { %1258 = shalt.err (!%p1255_p8)
}
 0x18d   :  { %s1259_s14 = scalar_lea.hbm %s1714_s7, 128 }
 0x18e   :  { %p1260_p9 = scmp.ne.s32.totalorder %s1714_s7, %s1259_s14  ;;  %p1263_p10 = scmp.lt.u32.totalorder %s1259_s14, %s1714_s7 }
 0x190   :  { %p1265_p11 = pnand %p1263_p10, %p1260_p9 }
 0x192   :  { %1268 = shalt.err (!%p1265_p11)
}
 0x193   :  { %962 = dma.vmem_to_hbm [thread:$0]  %s960_s6, 128, %s1714_s7, [#allocation4]  }
 0x194   :  { %s1061_s23 = spop %1060  ;;  %s1311_s30 = smov [#allocation11]  }
 0x195   :  { %s1063_s24 = spop %1062  ;;  %s969_s1 = sshll.u32 %s1311_s30, 4  ;;  %s970_s1 = int_to_ptr.vmem [resolvable:$true] %s969_s1 }
 0x196   :  { %s1065_s25 = spop %1064  ;;  %s727_s26 = sadd.f32 %s1063_s24, %s1061_s23 }
 0x197   :  { %s1269_s2 = scalar_lea.vmem %s970_s1, 128  ;;  %p1274_p13 = scmp.lt.s32.totalorder %s970_s1, %s970_s1 }
 0x198   :  { %p1270_p12 = scmp.ne.s32.totalorder %s970_s1, %s1269_s2  ;;  %p1275_p0 = scmp.lt.s32.totalorder %s1269_s2, %s1269_s2 }
 0x19a   :  { %p1276_p1 = por %p1275_p0, %p1274_p13 }
 0x19c   :  { %p1277_p2 = pnand %p1276_p1, %p1270_p12 }
 0x19d   :  { %s1067_s27 = spop %1066 }
 0x19e   :  { %s949_s29 = sadd.f32 %s1067_s27, %s1065_s25 }
 0x1a0   :  { %s950_s28 = ssub.f32 %s727_s26, %s949_s29 }
 0x1a2   :  { %v951_v59 = vstv %s950_s28 }
 0x1a3   :  { %952 = vst [vmem:[#allocation11] sm:$0xff] %v951_v59 }
 0x1a4   :  { %1280 = shalt.err (!%p1277_p2)
}
 0x1a5   :  { %s1281_s3 = scalar_lea.hbm %s1715_s8, 128 }
 0x1a6   :  { %p1282_p3 = scmp.ne.s32.totalorder %s1715_s8, %s1281_s3  ;;  %p1285_p4 = scmp.lt.u32.totalorder %s1281_s3, %s1715_s8 }
 0x1a8   :  { %p1287_p5 = pnand %p1285_p4, %p1282_p3 }
 0x1aa   :  { %1290 = shalt.err (!%p1287_p5)
}
 0x1ab   :  { %972 = dma.vmem_to_hbm [thread:$0]  %s970_s1, 128, %s1715_s8, [#allocation12]  }
 0x1ac   :  { %1297 = dma.done.wait [#allocation4], 128  }
 0x1ad   :  { %1298 = vsyncadd [#allocation4], 4294967168 }
 0x1ae   :  { %1299 = dma.done.wait [#allocation12], 128  }
 0x1af   :  { %1300 = vsyncadd [#allocation12], 4294967168 }
 0x1b0   :  { %979 = vsyncpa [#allocation3], 1 }
 0x1b1   :  { %980 = vsyncpa [#allocation6], 1 }
 0x1b2   :  { %981 = vsyncpa [#allocation9], 1 }
 0x1b3   :  { %982 = vsyncpa [#allocation4], 1 }
 0x1b4   :  { %983 = vsyncpa [#allocation12], 1 }

</bundles_post_ra>
